<compile_context>
chip_gen: v6e
topology: v6e:2x2x1
jax: 0.10.0
libtpu: 0.0.40
codegen_flags: <defaults>
</compile_context>

<pallas_src>
import functools

import jax
import jax.numpy as jnp
from jax.experimental import pallas as pl
from jax.experimental.pallas import tpu as pltpu


def _round_up(x: int, m: int) -> int:
    return (x + m - 1) // m * m


def _lstm_linear_kernel(x_ref, wih_ref, whh_ref, b_ref, wl_ref, bl_ref,
                        out_ref):
    """Fused-gate LSTM over time + Linear on h_T for one batch block.

    x_ref  : (T, BB, D)  time-major input block (f32)
    wih_ref: (D, 4H)     fused input->gate weights, gate order (i, f, g, o), bf16
    whh_ref: (H, 4H)     fused hidden->gate weights, bf16
    b_ref  : (1, 4H)     fused bias (b_ih + b_hh), f32
    wl_ref : (H, Op)     linear weight, lane-padded, bf16
    bl_ref : (1, Op)     linear bias, lane-padded, f32
    out_ref: (BB, Op)    final-step output (f32)
    """
    T, BB, D = x_ref.shape
    G = whh_ref.shape[-1]          # 4 * H (gates fused along lanes)
    H = G // 4

    # One-shot input projection for all timesteps (no recurrent dependency):
    # a single (T*BB, D) x (D, 4H) MXU op, bias folded in once.
    x_flat = x_ref[...].reshape(T * BB, D).astype(jnp.bfloat16)
    x_proj = (jnp.dot(x_flat, wih_ref[...],
                      preferred_element_type=jnp.float32)
              + b_ref[...])                                   # (T*BB, 4H) f32

    whh = whh_ref[...]                                        # (H, 4H) bf16

    h = jnp.zeros((BB, H), jnp.float32)
    c = jnp.zeros((BB, H), jnp.float32)

    # Static T -> fully unrolled serial recurrence; each step is one
    # (BB, H) x (H, 4H) MXU op plus elementwise/EUP work.
    for t in range(T):
        gates = (x_proj[t * BB:(t + 1) * BB, :]
                 + jnp.dot(h.astype(jnp.bfloat16), whh,
                           preferred_element_type=jnp.float32))   # (BB, 4H)
        i = jax.nn.sigmoid(gates[:, 0 * H:1 * H])
        f = jax.nn.sigmoid(gates[:, 1 * H:2 * H])
        g = jnp.tanh(gates[:, 2 * H:3 * H])
        o = jax.nn.sigmoid(gates[:, 3 * H:4 * H])
        c = f * c + i * g
        h = o * jnp.tanh(c)

    # Linear on the last-step hidden state == out[:, -1, :] in PyTorch.
    out_ref[...] = (jnp.dot(h.astype(jnp.bfloat16), wl_ref[...],
                            preferred_element_type=jnp.float32)
                    + bl_ref[...])


@functools.partial(jax.jit, static_argnames=("batch_block",))
def page_embedding_forward(region_inputs, w_ih, w_hh, b_ih, b_hh,
                           w_lin, b_lin, *, batch_block=8):
    """region_inputs: (B, T, D) f32 batch-first (like PyTorch batch_first=True).

    w_ih: (4, D, H), w_hh: (4, H, H), b_ih/b_hh: (4, H)  -- gate order i,f,g,o
    w_lin: (H, O), b_lin: (O,)
    Returns (B, O) f32.
    """
    B, T, D = region_inputs.shape
    H = w_hh.shape[-1]
    O = w_lin.shape[-1]
    G = 4 * H

    Bp = _round_up(max(B, 1), batch_block)     # sublane-multiple batch
    Op = _round_up(O, 128)                     # lane-dense output store

    # Fuse gates along the lane axis and fold both biases; bf16 MXU operands.
    wih_f = jnp.concatenate(list(w_ih), axis=-1).astype(jnp.bfloat16)   # (D, 4H)
    whh_f = jnp.concatenate(list(w_hh), axis=-1).astype(jnp.bfloat16)   # (H, 4H)
    b_f = (b_ih + b_hh).reshape(1, G).astype(jnp.float32)               # (1, 4H)

    wl_p = jnp.zeros((H, Op), jnp.bfloat16).at[:, :O].set(
        w_lin.astype(jnp.bfloat16))
    bl_p = jnp.zeros((1, Op), jnp.float32).at[:, :O].set(b_lin.reshape(1, O))

    # Time-major + batch padded to a sublane multiple.
    # TODO(synk): at production T*B*D, stream the sequence (T grid axis or
    # manual DMA) rather than transposing + holding the whole slab in VMEM.
    x_tm = jnp.transpose(region_inputs, (1, 0, 2))          # (T, B, D)
    x_tm = jnp.pad(x_tm, ((0, 0), (0, Bp - B), (0, 0)))      # (T, Bp, D)

    out_p = pl.pallas_call(
        _lstm_linear_kernel,
        out_shape=jax.ShapeDtypeStruct((Bp, Op), jnp.float32),
        grid_spec=pltpu.PrefetchScalarGridSpec(
            num_scalar_prefetch=0,
            grid=(Bp // batch_block,),
            in_specs=[
                pl.BlockSpec((T, batch_block, D), lambda i: (0, i, 0)),
                pl.BlockSpec((D, G), lambda i: (0, 0)),
                pl.BlockSpec((H, G), lambda i: (0, 0)),
                pl.BlockSpec((1, G), lambda i: (0, 0)),
                pl.BlockSpec((H, Op), lambda i: (0, 0)),
                pl.BlockSpec((1, Op), lambda i: (0, 0)),
            ],
            out_specs=pl.BlockSpec((batch_block, Op), lambda i: (i, 0)),
        ),
        compiler_params=pltpu.CompilerParams(
            dimension_semantics=("parallel",)),
    )(x_tm, wih_f, whh_f, b_f, wl_p, bl_p)

    return out_p[:B, :O]


def _reference_forward_bf16(x, w_ih, w_hh, b_ih, b_hh, w_lin, b_lin):
    """Pure-JAX reference mimicking kernel numerics (bf16 matmul operands,
    f32 accumulation and f32 state)."""
    B, T, D = x.shape
    H = w_hh.shape[-1]
    wih = jnp.concatenate(list(w_ih), axis=-1).astype(jnp.bfloat16)
    whh = jnp.concatenate(list(w_hh), axis=-1).astype(jnp.bfloat16)
    b = (b_ih + b_hh).reshape(1, 4 * H).astype(jnp.float32)
    h = jnp.zeros((B, H), jnp.float32)
    c = jnp.zeros((B, H), jnp.float32)
    for t in range(T):
        xt = x[:, t, :].astype(jnp.bfloat16)
        gates = ((jnp.dot(xt, wih, preferred_element_type=jnp.float32) + b)
                 + jnp.dot(h.astype(jnp.bfloat16), whh,
                           preferred_element_type=jnp.float32))
        i = jax.nn.sigmoid(gates[:, 0 * H:1 * H])
        f = jax.nn.sigmoid(gates[:, 1 * H:2 * H])
        g = jnp.tanh(gates[:, 2 * H:3 * H])
        o = jax.nn.sigmoid(gates[:, 3 * H:4 * H])
        c = f * c + i * g
        h = o * jnp.tanh(c)
    return (jnp.dot(h.astype(jnp.bfloat16), w_lin.astype(jnp.bfloat16),
                    preferred_element_type=jnp.float32)
            + b_lin.reshape(1, -1))


def _reference_forward_f32(x, w_ih, w_hh, b_ih, b_hh, w_lin, b_lin):
    """Full-f32 reference of the original module semantics."""
    B, T, D = x.shape
    H = w_hh.shape[-1]
    h = jnp.zeros((B, H), jnp.float32)
    c = jnp.zeros((B, H), jnp.float32)
    b = b_ih + b_hh
    for t in range(T):
        xt = x[:, t, :]
        i = jax.nn.sigmoid(xt @ w_ih[0] + h @ w_hh[0] + b[0])
        f = jax.nn.sigmoid(xt @ w_ih[1] + h @ w_hh[1] + b[1])
        g = jnp.tanh(xt @ w_ih[2] + h @ w_hh[2] + b[2])
        o = jax.nn.sigmoid(xt @ w_ih[3] + h @ w_hh[3] + b[3])
        c = f * c + i * g
        h = o * jnp.tanh(c)
    return h @ w_lin + b_lin.reshape(1, -1)


if __name__ == "__main__":
    # B pages, T regions per page (padded), D region-embedding dim,
    # H LSTM hidden size, O page-embedding output size.
    B, T, D, H, O = 2, 8, 32, 32, 32

    key = jax.random.PRNGKey(0)
    ks = jax.random.split(key, 7)
    scale = 1.0 / jnp.sqrt(jnp.float32(H))

    region_inputs = jax.random.normal(ks[0], (B, T, D), jnp.float32)
    w_ih = jax.random.uniform(ks[1], (4, D, H), jnp.float32, -scale, scale)
    w_hh = jax.random.uniform(ks[2], (4, H, H), jnp.float32, -scale, scale)
    b_ih = jax.random.uniform(ks[3], (4, H), jnp.float32, -scale, scale)
    b_hh = jax.random.uniform(ks[4], (4, H), jnp.float32, -scale, scale)
    w_lin = jax.random.uniform(ks[5], (H, O), jnp.float32, -scale, scale)
    b_lin = jax.random.uniform(ks[6], (O,), jnp.float32, -scale, scale)

    out = page_embedding_forward(region_inputs, w_ih, w_hh, b_ih, b_hh,
                                 w_lin, b_lin)
    out = jax.block_until_ready(out)
    assert out.shape == (B, O), f"Bad output shape: {out.shape}"

    # Tight check vs a reference with identical bf16-matmul / f32-state numerics.
    ref_bf16 = _reference_forward_bf16(region_inputs, w_ih, w_hh, b_ih, b_hh,
                                       w_lin, b_lin)
    assert jnp.allclose(out, ref_bf16, rtol=5e-3, atol=5e-3), \
        "mismatch vs bf16-matmul reference"

    # Looser sanity check vs the full-f32 semantics of the original module.
    ref_f32 = _reference_forward_f32(region_inputs, w_ih, w_hh, b_ih, b_hh,
                                     w_lin, b_lin)
    assert jnp.allclose(out, ref_f32, rtol=1e-1, atol=1e-1), \
        "mismatch vs f32 reference"

    print("KERNEL_OK")
</pallas_src>

<mosaic_0001>
module attributes {stable_mosaic.version = 11 : i64} {
  func.func @_lstm_linear_kernel(%arg0: i32, %arg1: memref<8x8x32xf32, #tpu.memory_space<vmem>>, %arg2: memref<32x128xbf16, #tpu.memory_space<vmem>>, %arg3: memref<32x128xbf16, #tpu.memory_space<vmem>>, %arg4: memref<1x128xf32, #tpu.memory_space<vmem>>, %arg5: memref<32x128xbf16, #tpu.memory_space<vmem>>, %arg6: memref<1x128xf32, #tpu.memory_space<vmem>>, %arg7: memref<8x128xf32, #tpu.memory_space<vmem>>) attributes {dimension_semantics = [#tpu.dimension_semantics<parallel>], iteration_bounds = array<i64: 1>, scalar_prefetch = 0 : i64, scratch_operands = 0 : i64, tpu.core_type = #tpu.core_type<tc>, window_params = [{transform_indices = @transform_0, window_bounds = array<i64: 8, 8, 32>}, {pipeline_mode = #tpu.pipeline_mode<synchronous>, transform_indices = @transform_1, window_bounds = array<i64: 32, 128>}, {pipeline_mode = #tpu.pipeline_mode<synchronous>, transform_indices = @transform_2, window_bounds = array<i64: 32, 128>}, {pipeline_mode = #tpu.pipeline_mode<synchronous>, transform_indices = @transform_3, window_bounds = array<i64: 1, 128>}, {pipeline_mode = #tpu.pipeline_mode<synchronous>, transform_indices = @transform_4, window_bounds = array<i64: 32, 128>}, {pipeline_mode = #tpu.pipeline_mode<synchronous>, transform_indices = @transform_5, window_bounds = array<i64: 1, 128>}, {transform_indices = @transform_6, window_bounds = array<i64: 8, 128>}]} {
    %c0 = arith.constant 0 : index
    %c0_0 = arith.constant 0 : index
    %c0_1 = arith.constant 0 : index
    %0 = vector.load %arg1[%c0, %c0_0, %c0_1] : memref<8x8x32xf32, #tpu.memory_space<vmem>>, vector<8x8x32xf32>
    %1 = vector.shape_cast %0 : vector<8x8x32xf32> to vector<64x32xf32>
    %2 = arith.truncf %1 : vector<64x32xf32> to vector<64x32xbf16>
    %c0_2 = arith.constant 0 : index
    %c0_3 = arith.constant 0 : index
    %3 = vector.load %arg2[%c0_2, %c0_3] : memref<32x128xbf16, #tpu.memory_space<vmem>>, vector<32x128xbf16>
    %cst = arith.constant dense<0.000000e+00> : vector<64x128xf32>
    %4 = tpu.matmul %2, %3, %cst {dimension_numbers = #tpu.dot_dimension_numbers<[1], [0], [0], [1], [0, 0, 1, 1], [], []>} : vector<64x32xbf16>, vector<32x128xbf16>, vector<64x128xf32> -> vector<64x128xf32>
    %c0_4 = arith.constant 0 : index
    %c0_5 = arith.constant 0 : index
    %5 = vector.load %arg4[%c0_4, %c0_5] : memref<1x128xf32, #tpu.memory_space<vmem>>, vector<1x128xf32>
    %6 = vector.broadcast %5 : vector<1x128xf32> to vector<64x128xf32>
    %7 = arith.addf %4, %6 : vector<64x128xf32>
    %c0_6 = arith.constant 0 : index
    %c0_7 = arith.constant 0 : index
    %8 = vector.load %arg3[%c0_6, %c0_7] : memref<32x128xbf16, #tpu.memory_space<vmem>>, vector<32x128xbf16>
    %cst_8 = arith.constant 0.000000e+00 : f32
    %9 = vector.broadcast %cst_8 : f32 to vector<8x32xf32>
    %cst_9 = arith.constant 0.000000e+00 : f32
    %10 = vector.broadcast %cst_9 : f32 to vector<8x32xf32>
    %11 = vector.extract_strided_slice %7 {offsets = [0, 0], sizes = [8, 128], strides = [1, 1]} : vector<64x128xf32> to vector<8x128xf32>
    %12 = arith.truncf %9 : vector<8x32xf32> to vector<8x32xbf16>
    %cst_10 = arith.constant dense<0.000000e+00> : vector<8x128xf32>
    %13 = tpu.matmul %12, %8, %cst_10 {dimension_numbers = #tpu.dot_dimension_numbers<[1], [0], [0], [1], [0, 0, 1, 1], [], []>} : vector<8x32xbf16>, vector<32x128xbf16>, vector<8x128xf32> -> vector<8x128xf32>
    %14 = arith.addf %11, %13 : vector<8x128xf32>
    %15 = vector.extract_strided_slice %14 {offsets = [0, 0], sizes = [8, 32], strides = [1, 1]} : vector<8x128xf32> to vector<8x32xf32>
    %16 = arith.negf %15 : vector<8x32xf32>
    %17 = math.exp %16 : vector<8x32xf32>
    %cst_11 = arith.constant 1.000000e+00 : f32
    %18 = vector.broadcast %cst_11 : f32 to vector<8x32xf32>
    %19 = arith.addf %18, %17 : vector<8x32xf32>
    %20 = arith.divf %18, %19 : vector<8x32xf32>
    %21 = vector.extract_strided_slice %14 {offsets = [0, 32], sizes = [8, 32], strides = [1, 1]} : vector<8x128xf32> to vector<8x32xf32>
    %22 = arith.negf %21 : vector<8x32xf32>
    %23 = math.exp %22 : vector<8x32xf32>
    %cst_12 = arith.constant 1.000000e+00 : f32
    %24 = vector.broadcast %cst_12 : f32 to vector<8x32xf32>
    %25 = arith.addf %24, %23 : vector<8x32xf32>
    %26 = arith.divf %24, %25 : vector<8x32xf32>
    %27 = vector.extract_strided_slice %14 {offsets = [0, 64], sizes = [8, 32], strides = [1, 1]} : vector<8x128xf32> to vector<8x32xf32>
    %28 = math.tanh %27 : vector<8x32xf32>
    %29 = vector.extract_strided_slice %14 {offsets = [0, 96], sizes = [8, 32], strides = [1, 1]} : vector<8x128xf32> to vector<8x32xf32>
    %30 = arith.negf %29 : vector<8x32xf32>
    %31 = math.exp %30 : vector<8x32xf32>
    %cst_13 = arith.constant 1.000000e+00 : f32
    %32 = vector.broadcast %cst_13 : f32 to vector<8x32xf32>
    %33 = arith.addf %32, %31 : vector<8x32xf32>
    %34 = arith.divf %32, %33 : vector<8x32xf32>
    %35 = arith.mulf %26, %10 : vector<8x32xf32>
    %36 = arith.mulf %20, %28 : vector<8x32xf32>
    %37 = arith.addf %35, %36 : vector<8x32xf32>
    %38 = math.tanh %37 : vector<8x32xf32>
    %39 = arith.mulf %34, %38 : vector<8x32xf32>
    %40 = vector.extract_strided_slice %7 {offsets = [8, 0], sizes = [8, 128], strides = [1, 1]} : vector<64x128xf32> to vector<8x128xf32>
    %41 = arith.truncf %39 : vector<8x32xf32> to vector<8x32xbf16>
    %cst_14 = arith.constant dense<0.000000e+00> : vector<8x128xf32>
    %42 = tpu.matmul %41, %8, %cst_14 {dimension_numbers = #tpu.dot_dimension_numbers<[1], [0], [0], [1], [0, 0, 1, 1], [], []>} : vector<8x32xbf16>, vector<32x128xbf16>, vector<8x128xf32> -> vector<8x128xf32>
    %43 = arith.addf %40, %42 : vector<8x128xf32>
    %44 = vector.extract_strided_slice %43 {offsets = [0, 0], sizes = [8, 32], strides = [1, 1]} : vector<8x128xf32> to vector<8x32xf32>
    %45 = arith.negf %44 : vector<8x32xf32>
    %46 = math.exp %45 : vector<8x32xf32>
    %cst_15 = arith.constant 1.000000e+00 : f32
    %47 = vector.broadcast %cst_15 : f32 to vector<8x32xf32>
    %48 = arith.addf %47, %46 : vector<8x32xf32>
    %49 = arith.divf %47, %48 : vector<8x32xf32>
    %50 = vector.extract_strided_slice %43 {offsets = [0, 32], sizes = [8, 32], strides = [1, 1]} : vector<8x128xf32> to vector<8x32xf32>
    %51 = arith.negf %50 : vector<8x32xf32>
    %52 = math.exp %51 : vector<8x32xf32>
    %cst_16 = arith.constant 1.000000e+00 : f32
    %53 = vector.broadcast %cst_16 : f32 to vector<8x32xf32>
    %54 = arith.addf %53, %52 : vector<8x32xf32>
    %55 = arith.divf %53, %54 : vector<8x32xf32>
    %56 = vector.extract_strided_slice %43 {offsets = [0, 64], sizes = [8, 32], strides = [1, 1]} : vector<8x128xf32> to vector<8x32xf32>
    %57 = math.tanh %56 : vector<8x32xf32>
    %58 = vector.extract_strided_slice %43 {offsets = [0, 96], sizes = [8, 32], strides = [1, 1]} : vector<8x128xf32> to vector<8x32xf32>
    %59 = arith.negf %58 : vector<8x32xf32>
    %60 = math.exp %59 : vector<8x32xf32>
    %cst_17 = arith.constant 1.000000e+00 : f32
    %61 = vector.broadcast %cst_17 : f32 to vector<8x32xf32>
    %62 = arith.addf %61, %60 : vector<8x32xf32>
    %63 = arith.divf %61, %62 : vector<8x32xf32>
    %64 = arith.mulf %55, %37 : vector<8x32xf32>
    %65 = arith.mulf %49, %57 : vector<8x32xf32>
    %66 = arith.addf %64, %65 : vector<8x32xf32>
    %67 = math.tanh %66 : vector<8x32xf32>
    %68 = arith.mulf %63, %67 : vector<8x32xf32>
    %69 = vector.extract_strided_slice %7 {offsets = [16, 0], sizes = [8, 128], strides = [1, 1]} : vector<64x128xf32> to vector<8x128xf32>
    %70 = arith.truncf %68 : vector<8x32xf32> to vector<8x32xbf16>
    %cst_18 = arith.constant dense<0.000000e+00> : vector<8x128xf32>
    %71 = tpu.matmul %70, %8, %cst_18 {dimension_numbers = #tpu.dot_dimension_numbers<[1], [0], [0], [1], [0, 0, 1, 1], [], []>} : vector<8x32xbf16>, vector<32x128xbf16>, vector<8x128xf32> -> vector<8x128xf32>
    %72 = arith.addf %69, %71 : vector<8x128xf32>
    %73 = vector.extract_strided_slice %72 {offsets = [0, 0], sizes = [8, 32], strides = [1, 1]} : vector<8x128xf32> to vector<8x32xf32>
    %74 = arith.negf %73 : vector<8x32xf32>
    %75 = math.exp %74 : vector<8x32xf32>
    %cst_19 = arith.constant 1.000000e+00 : f32
    %76 = vector.broadcast %cst_19 : f32 to vector<8x32xf32>
    %77 = arith.addf %76, %75 : vector<8x32xf32>
    %78 = arith.divf %76, %77 : vector<8x32xf32>
    %79 = vector.extract_strided_slice %72 {offsets = [0, 32], sizes = [8, 32], strides = [1, 1]} : vector<8x128xf32> to vector<8x32xf32>
    %80 = arith.negf %79 : vector<8x32xf32>
    %81 = math.exp %80 : vector<8x32xf32>
    %cst_20 = arith.constant 1.000000e+00 : f32
    %82 = vector.broadcast %cst_20 : f32 to vector<8x32xf32>
    %83 = arith.addf %82, %81 : vector<8x32xf32>
    %84 = arith.divf %82, %83 : vector<8x32xf32>
    %85 = vector.extract_strided_slice %72 {offsets = [0, 64], sizes = [8, 32], strides = [1, 1]} : vector<8x128xf32> to vector<8x32xf32>
    %86 = math.tanh %85 : vector<8x32xf32>
    %87 = vector.extract_strided_slice %72 {offsets = [0, 96], sizes = [8, 32], strides = [1, 1]} : vector<8x128xf32> to vector<8x32xf32>
    %88 = arith.negf %87 : vector<8x32xf32>
    %89 = math.exp %88 : vector<8x32xf32>
    %cst_21 = arith.constant 1.000000e+00 : f32
    %90 = vector.broadcast %cst_21 : f32 to vector<8x32xf32>
    %91 = arith.addf %90, %89 : vector<8x32xf32>
    %92 = arith.divf %90, %91 : vector<8x32xf32>
    %93 = arith.mulf %84, %66 : vector<8x32xf32>
    %94 = arith.mulf %78, %86 : vector<8x32xf32>
    %95 = arith.addf %93, %94 : vector<8x32xf32>
    %96 = math.tanh %95 : vector<8x32xf32>
    %97 = arith.mulf %92, %96 : vector<8x32xf32>
    %98 = vector.extract_strided_slice %7 {offsets = [24, 0], sizes = [8, 128], strides = [1, 1]} : vector<64x128xf32> to vector<8x128xf32>
    %99 = arith.truncf %97 : vector<8x32xf32> to vector<8x32xbf16>
    %cst_22 = arith.constant dense<0.000000e+00> : vector<8x128xf32>
    %100 = tpu.matmul %99, %8, %cst_22 {dimension_numbers = #tpu.dot_dimension_numbers<[1], [0], [0], [1], [0, 0, 1, 1], [], []>} : vector<8x32xbf16>, vector<32x128xbf16>, vector<8x128xf32> -> vector<8x128xf32>
    %101 = arith.addf %98, %100 : vector<8x128xf32>
    %102 = vector.extract_strided_slice %101 {offsets = [0, 0], sizes = [8, 32], strides = [1, 1]} : vector<8x128xf32> to vector<8x32xf32>
    %103 = arith.negf %102 : vector<8x32xf32>
    %104 = math.exp %103 : vector<8x32xf32>
    %cst_23 = arith.constant 1.000000e+00 : f32
    %105 = vector.broadcast %cst_23 : f32 to vector<8x32xf32>
    %106 = arith.addf %105, %104 : vector<8x32xf32>
    %107 = arith.divf %105, %106 : vector<8x32xf32>
    %108 = vector.extract_strided_slice %101 {offsets = [0, 32], sizes = [8, 32], strides = [1, 1]} : vector<8x128xf32> to vector<8x32xf32>
    %109 = arith.negf %108 : vector<8x32xf32>
    %110 = math.exp %109 : vector<8x32xf32>
    %cst_24 = arith.constant 1.000000e+00 : f32
    %111 = vector.broadcast %cst_24 : f32 to vector<8x32xf32>
    %112 = arith.addf %111, %110 : vector<8x32xf32>
    %113 = arith.divf %111, %112 : vector<8x32xf32>
    %114 = vector.extract_strided_slice %101 {offsets = [0, 64], sizes = [8, 32], strides = [1, 1]} : vector<8x128xf32> to vector<8x32xf32>
    %115 = math.tanh %114 : vector<8x32xf32>
    %116 = vector.extract_strided_slice %101 {offsets = [0, 96], sizes = [8, 32], strides = [1, 1]} : vector<8x128xf32> to vector<8x32xf32>
    %117 = arith.negf %116 : vector<8x32xf32>
    %118 = math.exp %117 : vector<8x32xf32>
    %cst_25 = arith.constant 1.000000e+00 : f32
    %119 = vector.broadcast %cst_25 : f32 to vector<8x32xf32>
    %120 = arith.addf %119, %118 : vector<8x32xf32>
    %121 = arith.divf %119, %120 : vector<8x32xf32>
    %122 = arith.mulf %113, %95 : vector<8x32xf32>
    %123 = arith.mulf %107, %115 : vector<8x32xf32>
    %124 = arith.addf %122, %123 : vector<8x32xf32>
    %125 = math.tanh %124 : vector<8x32xf32>
    %126 = arith.mulf %121, %125 : vector<8x32xf32>
    %127 = vector.extract_strided_slice %7 {offsets = [32, 0], sizes = [8, 128], strides = [1, 1]} : vector<64x128xf32> to vector<8x128xf32>
    %128 = arith.truncf %126 : vector<8x32xf32> to vector<8x32xbf16>
    %cst_26 = arith.constant dense<0.000000e+00> : vector<8x128xf32>
    %129 = tpu.matmul %128, %8, %cst_26 {dimension_numbers = #tpu.dot_dimension_numbers<[1], [0], [0], [1], [0, 0, 1, 1], [], []>} : vector<8x32xbf16>, vector<32x128xbf16>, vector<8x128xf32> -> vector<8x128xf32>
    %130 = arith.addf %127, %129 : vector<8x128xf32>
    %131 = vector.extract_strided_slice %130 {offsets = [0, 0], sizes = [8, 32], strides = [1, 1]} : vector<8x128xf32> to vector<8x32xf32>
    %132 = arith.negf %131 : vector<8x32xf32>
    %133 = math.exp %132 : vector<8x32xf32>
    %cst_27 = arith.constant 1.000000e+00 : f32
    %134 = vector.broadcast %cst_27 : f32 to vector<8x32xf32>
    %135 = arith.addf %134, %133 : vector<8x32xf32>
    %136 = arith.divf %134, %135 : vector<8x32xf32>
    %137 = vector.extract_strided_slice %130 {offsets = [0, 32], sizes = [8, 32], strides = [1, 1]} : vector<8x128xf32> to vector<8x32xf32>
    %138 = arith.negf %137 : vector<8x32xf32>
    %139 = math.exp %138 : vector<8x32xf32>
    %cst_28 = arith.constant 1.000000e+00 : f32
    %140 = vector.broadcast %cst_28 : f32 to vector<8x32xf32>
    %141 = arith.addf %140, %139 : vector<8x32xf32>
    %142 = arith.divf %140, %141 : vector<8x32xf32>
    %143 = vector.extract_strided_slice %130 {offsets = [0, 64], sizes = [8, 32], strides = [1, 1]} : vector<8x128xf32> to vector<8x32xf32>
    %144 = math.tanh %143 : vector<8x32xf32>
    %145 = vector.extract_strided_slice %130 {offsets = [0, 96], sizes = [8, 32], strides = [1, 1]} : vector<8x128xf32> to vector<8x32xf32>
    %146 = arith.negf %145 : vector<8x32xf32>
    %147 = math.exp %146 : vector<8x32xf32>
    %cst_29 = arith.constant 1.000000e+00 : f32
    %148 = vector.broadcast %cst_29 : f32 to vector<8x32xf32>
    %149 = arith.addf %148, %147 : vector<8x32xf32>
    %150 = arith.divf %148, %149 : vector<8x32xf32>
    %151 = arith.mulf %142, %124 : vector<8x32xf32>
    %152 = arith.mulf %136, %144 : vector<8x32xf32>
    %153 = arith.addf %151, %152 : vector<8x32xf32>
    %154 = math.tanh %153 : vector<8x32xf32>
    %155 = arith.mulf %150, %154 : vector<8x32xf32>
    %156 = vector.extract_strided_slice %7 {offsets = [40, 0], sizes = [8, 128], strides = [1, 1]} : vector<64x128xf32> to vector<8x128xf32>
    %157 = arith.truncf %155 : vector<8x32xf32> to vector<8x32xbf16>
    %cst_30 = arith.constant dense<0.000000e+00> : vector<8x128xf32>
    %158 = tpu.matmul %157, %8, %cst_30 {dimension_numbers = #tpu.dot_dimension_numbers<[1], [0], [0], [1], [0, 0, 1, 1], [], []>} : vector<8x32xbf16>, vector<32x128xbf16>, vector<8x128xf32> -> vector<8x128xf32>
    %159 = arith.addf %156, %158 : vector<8x128xf32>
    %160 = vector.extract_strided_slice %159 {offsets = [0, 0], sizes = [8, 32], strides = [1, 1]} : vector<8x128xf32> to vector<8x32xf32>
    %161 = arith.negf %160 : vector<8x32xf32>
    %162 = math.exp %161 : vector<8x32xf32>
    %cst_31 = arith.constant 1.000000e+00 : f32
    %163 = vector.broadcast %cst_31 : f32 to vector<8x32xf32>
    %164 = arith.addf %163, %162 : vector<8x32xf32>
    %165 = arith.divf %163, %164 : vector<8x32xf32>
    %166 = vector.extract_strided_slice %159 {offsets = [0, 32], sizes = [8, 32], strides = [1, 1]} : vector<8x128xf32> to vector<8x32xf32>
    %167 = arith.negf %166 : vector<8x32xf32>
    %168 = math.exp %167 : vector<8x32xf32>
    %cst_32 = arith.constant 1.000000e+00 : f32
    %169 = vector.broadcast %cst_32 : f32 to vector<8x32xf32>
    %170 = arith.addf %169, %168 : vector<8x32xf32>
    %171 = arith.divf %169, %170 : vector<8x32xf32>
    %172 = vector.extract_strided_slice %159 {offsets = [0, 64], sizes = [8, 32], strides = [1, 1]} : vector<8x128xf32> to vector<8x32xf32>
    %173 = math.tanh %172 : vector<8x32xf32>
    %174 = vector.extract_strided_slice %159 {offsets = [0, 96], sizes = [8, 32], strides = [1, 1]} : vector<8x128xf32> to vector<8x32xf32>
    %175 = arith.negf %174 : vector<8x32xf32>
    %176 = math.exp %175 : vector<8x32xf32>
    %cst_33 = arith.constant 1.000000e+00 : f32
    %177 = vector.broadcast %cst_33 : f32 to vector<8x32xf32>
    %178 = arith.addf %177, %176 : vector<8x32xf32>
    %179 = arith.divf %177, %178 : vector<8x32xf32>
    %180 = arith.mulf %171, %153 : vector<8x32xf32>
    %181 = arith.mulf %165, %173 : vector<8x32xf32>
    %182 = arith.addf %180, %181 : vector<8x32xf32>
    %183 = math.tanh %182 : vector<8x32xf32>
    %184 = arith.mulf %179, %183 : vector<8x32xf32>
    %185 = vector.extract_strided_slice %7 {offsets = [48, 0], sizes = [8, 128], strides = [1, 1]} : vector<64x128xf32> to vector<8x128xf32>
    %186 = arith.truncf %184 : vector<8x32xf32> to vector<8x32xbf16>
    %cst_34 = arith.constant dense<0.000000e+00> : vector<8x128xf32>
    %187 = tpu.matmul %186, %8, %cst_34 {dimension_numbers = #tpu.dot_dimension_numbers<[1], [0], [0], [1], [0, 0, 1, 1], [], []>} : vector<8x32xbf16>, vector<32x128xbf16>, vector<8x128xf32> -> vector<8x128xf32>
    %188 = arith.addf %185, %187 : vector<8x128xf32>
    %189 = vector.extract_strided_slice %188 {offsets = [0, 0], sizes = [8, 32], strides = [1, 1]} : vector<8x128xf32> to vector<8x32xf32>
    %190 = arith.negf %189 : vector<8x32xf32>
    %191 = math.exp %190 : vector<8x32xf32>
    %cst_35 = arith.constant 1.000000e+00 : f32
    %192 = vector.broadcast %cst_35 : f32 to vector<8x32xf32>
    %193 = arith.addf %192, %191 : vector<8x32xf32>
    %194 = arith.divf %192, %193 : vector<8x32xf32>
    %195 = vector.extract_strided_slice %188 {offsets = [0, 32], sizes = [8, 32], strides = [1, 1]} : vector<8x128xf32> to vector<8x32xf32>
    %196 = arith.negf %195 : vector<8x32xf32>
    %197 = math.exp %196 : vector<8x32xf32>
    %cst_36 = arith.constant 1.000000e+00 : f32
    %198 = vector.broadcast %cst_36 : f32 to vector<8x32xf32>
    %199 = arith.addf %198, %197 : vector<8x32xf32>
    %200 = arith.divf %198, %199 : vector<8x32xf32>
    %201 = vector.extract_strided_slice %188 {offsets = [0, 64], sizes = [8, 32], strides = [1, 1]} : vector<8x128xf32> to vector<8x32xf32>
    %202 = math.tanh %201 : vector<8x32xf32>
    %203 = vector.extract_strided_slice %188 {offsets = [0, 96], sizes = [8, 32], strides = [1, 1]} : vector<8x128xf32> to vector<8x32xf32>
    %204 = arith.negf %203 : vector<8x32xf32>
    %205 = math.exp %204 : vector<8x32xf32>
    %cst_37 = arith.constant 1.000000e+00 : f32
    %206 = vector.broadcast %cst_37 : f32 to vector<8x32xf32>
    %207 = arith.addf %206, %205 : vector<8x32xf32>
    %208 = arith.divf %206, %207 : vector<8x32xf32>
    %209 = arith.mulf %200, %182 : vector<8x32xf32>
    %210 = arith.mulf %194, %202 : vector<8x32xf32>
    %211 = arith.addf %209, %210 : vector<8x32xf32>
    %212 = math.tanh %211 : vector<8x32xf32>
    %213 = arith.mulf %208, %212 : vector<8x32xf32>
    %214 = vector.extract_strided_slice %7 {offsets = [56, 0], sizes = [8, 128], strides = [1, 1]} : vector<64x128xf32> to vector<8x128xf32>
    %215 = arith.truncf %213 : vector<8x32xf32> to vector<8x32xbf16>
    %cst_38 = arith.constant dense<0.000000e+00> : vector<8x128xf32>
    %216 = tpu.matmul %215, %8, %cst_38 {dimension_numbers = #tpu.dot_dimension_numbers<[1], [0], [0], [1], [0, 0, 1, 1], [], []>} : vector<8x32xbf16>, vector<32x128xbf16>, vector<8x128xf32> -> vector<8x128xf32>
    %217 = arith.addf %214, %216 : vector<8x128xf32>
    %218 = vector.extract_strided_slice %217 {offsets = [0, 0], sizes = [8, 32], strides = [1, 1]} : vector<8x128xf32> to vector<8x32xf32>
    %219 = arith.negf %218 : vector<8x32xf32>
    %220 = math.exp %219 : vector<8x32xf32>
    %cst_39 = arith.constant 1.000000e+00 : f32
    %221 = vector.broadcast %cst_39 : f32 to vector<8x32xf32>
    %222 = arith.addf %221, %220 : vector<8x32xf32>
    %223 = arith.divf %221, %222 : vector<8x32xf32>
    %224 = vector.extract_strided_slice %217 {offsets = [0, 32], sizes = [8, 32], strides = [1, 1]} : vector<8x128xf32> to vector<8x32xf32>
    %225 = arith.negf %224 : vector<8x32xf32>
    %226 = math.exp %225 : vector<8x32xf32>
    %cst_40 = arith.constant 1.000000e+00 : f32
    %227 = vector.broadcast %cst_40 : f32 to vector<8x32xf32>
    %228 = arith.addf %227, %226 : vector<8x32xf32>
    %229 = arith.divf %227, %228 : vector<8x32xf32>
    %230 = vector.extract_strided_slice %217 {offsets = [0, 64], sizes = [8, 32], strides = [1, 1]} : vector<8x128xf32> to vector<8x32xf32>
    %231 = math.tanh %230 : vector<8x32xf32>
    %232 = vector.extract_strided_slice %217 {offsets = [0, 96], sizes = [8, 32], strides = [1, 1]} : vector<8x128xf32> to vector<8x32xf32>
    %233 = arith.negf %232 : vector<8x32xf32>
    %234 = math.exp %233 : vector<8x32xf32>
    %cst_41 = arith.constant 1.000000e+00 : f32
    %235 = vector.broadcast %cst_41 : f32 to vector<8x32xf32>
    %236 = arith.addf %235, %234 : vector<8x32xf32>
    %237 = arith.divf %235, %236 : vector<8x32xf32>
    %238 = arith.mulf %229, %211 : vector<8x32xf32>
    %239 = arith.mulf %223, %231 : vector<8x32xf32>
    %240 = arith.addf %238, %239 : vector<8x32xf32>
    %241 = math.tanh %240 : vector<8x32xf32>
    %242 = arith.mulf %237, %241 : vector<8x32xf32>
    %243 = arith.truncf %242 : vector<8x32xf32> to vector<8x32xbf16>
    %c0_42 = arith.constant 0 : index
    %c0_43 = arith.constant 0 : index
    %244 = vector.load %arg5[%c0_42, %c0_43] : memref<32x128xbf16, #tpu.memory_space<vmem>>, vector<32x128xbf16>
    %cst_44 = arith.constant dense<0.000000e+00> : vector<8x128xf32>
    %245 = tpu.matmul %243, %244, %cst_44 {dimension_numbers = #tpu.dot_dimension_numbers<[1], [0], [0], [1], [0, 0, 1, 1], [], []>} : vector<8x32xbf16>, vector<32x128xbf16>, vector<8x128xf32> -> vector<8x128xf32>
    %c0_45 = arith.constant 0 : index
    %c0_46 = arith.constant 0 : index
    %246 = vector.load %arg6[%c0_45, %c0_46] : memref<1x128xf32, #tpu.memory_space<vmem>>, vector<1x128xf32>
    %247 = vector.broadcast %246 : vector<1x128xf32> to vector<8x128xf32>
    %248 = arith.addf %245, %247 : vector<8x128xf32>
    %c0_47 = arith.constant 0 : index
    %c0_48 = arith.constant 0 : index
    %249 = vector.load %arg7[%c0_47, %c0_48] : memref<8x128xf32, #tpu.memory_space<vmem>>, vector<8x128xf32>
    tpu.vector_store %arg7[%c0_47, %c0_48], %248 {strides = array<i32>} : memref<8x128xf32, #tpu.memory_space<vmem>>, vector<8x128xf32>,
    return
  }
  func.func @transform_0(%arg0: i32) -> (i32, i32, i32) {
    %c0_i32 = arith.constant 0 : i32
    %c0_i32_0 = arith.constant 0 : i32
    %c0_i32_1 = arith.constant 0 : i32
    return %c0_i32, %arg0, %c0_i32_0 : i32, i32, i32
  }
  func.func @transform_1(%arg0: i32) -> (i32, i32) {
    %c0_i32 = arith.constant 0 : i32
    %c0_i32_0 = arith.constant 0 : i32
    %c0_i32_1 = arith.constant 0 : i32
    return %c0_i32, %c0_i32_0 : i32, i32
  }
  func.func @transform_2(%arg0: i32) -> (i32, i32) {
    %c0_i32 = arith.constant 0 : i32
    %c0_i32_0 = arith.constant 0 : i32
    %c0_i32_1 = arith.constant 0 : i32
    return %c0_i32, %c0_i32_0 : i32, i32
  }
  func.func @transform_3(%arg0: i32) -> (i32, i32) {
    %c0_i32 = arith.constant 0 : i32
    %c0_i32_0 = arith.constant 0 : i32
    %c0_i32_1 = arith.constant 0 : i32
    return %c0_i32, %c0_i32_0 : i32, i32
  }
  func.func @transform_4(%arg0: i32) -> (i32, i32) {
    %c0_i32 = arith.constant 0 : i32
    %c0_i32_0 = arith.constant 0 : i32
    %c0_i32_1 = arith.constant 0 : i32
    return %c0_i32, %c0_i32_0 : i32, i32
  }
  func.func @transform_5(%arg0: i32) -> (i32, i32) {
    %c0_i32 = arith.constant 0 : i32
    %c0_i32_0 = arith.constant 0 : i32
    %c0_i32_1 = arith.constant 0 : i32
    return %c0_i32, %c0_i32_0 : i32, i32
  }
  func.func @transform_6(%arg0: i32) -> (i32, i32) {
    %c0_i32 = arith.constant 0 : i32
    %c0_i32_0 = arith.constant 0 : i32
    return %arg0, %c0_i32 : i32, i32
  }
}

</mosaic_0001>

<bundles_post_ra>
// kernel: page_embedding_forward.1
= control target key start
LH: loop header
LB: loop body
LE: loop exit
PB: predicated region body
PF: predicated region fallthrough
CT: control target
= control target key end

     0   :  { %v1020_v0 = vmov 0.0   ;;  %vm1021_vm0 = vmmov 0   ;;  %vm59_vm1 = vcmask 261120   ;;  %v1022_v11 = vmov 0   ;;  %s1023_s13 = smov 64   ;;  %s1239_s1 = inlined_call_operand.vmem [shape: bf16[32,128], index: 1, kind: input, shape index: {}]   ;;  %s1240_s2 = inlined_call_operand.vmem [shape: bf16[32,128], index: 2, kind: input, shape index: {}]   ;;  %s1241_s0 = inlined_call_operand.vmem [shape: f32[8,8,32], index: 0, kind: input, shape index: {}]   ;;  %s1242_s3 = inlined_call_operand.vmem [shape: f32[1,128], index: 3, kind: input, shape index: {}]   ;;  %s1243_s4 = inlined_call_operand.vmem [shape: bf16[32,128], index: 4, kind: input, shape index: {}]   ;;  %s1244_s5 = inlined_call_operand.vmem [shape: f32[1,128], index: 5, kind: input, shape index: {}]   ;;  %s1245_s6 = inlined_call_operand.vmem [shape: f32[8,128], index: 6, kind: output, shape index: {}]  }
   0x1   :  { %873 = vmatprep.subr.bf16.mxu1 %v1020_v0  ;;  %v950_v1 = vld [vmem:[%s1239_s1 + $0x8] sm:$0xff]   ;;  %877 = vmatprep.mubr.msk.bf16.mxu1 %vm1021_vm0, %v1020_v0  ;;  %v952_v3 = vld [vmem:[%s1239_s1] sm:$0xff]   ;;  %v26_v7 = vld [vmem:[%s1241_s0 + $0x10] sm:$0xff] }
   0x2   :  { %v1069_v2 = vld [vmem:[%s1240_s2 + $0x8] sm:$0xff]   ;;  %861 = vmatprep.subr.bf16.mxu0 %v950_v1  ;;  %v1078_v4 = vld [vmem:[%s1240_s2] sm:$0xff]   ;;  %v27_v9 = vld [vmem:[%s1241_s0 + $0x18] sm:$0xff] }
   0x3   :  { %874 = vmatpush3.bf16.msra.mxu1 %v1069_v2  ;;  %862 = vmatpush3.bf16.msra.mxu0 %v950_v1  ;;  %v24_v5 = vld [vmem:[%s1241_s0] sm:$0xff]  ;;  %v25_v6 = vld [vmem:[%s1241_s0 + $0x8] sm:$0xff]  ;;  %v33_v10 = vpack.c.bf16 %v27_v9, %v26_v7  ;;  %v30_v56 = vld [vmem:[%s1241_s0 + $0x30] sm:$0xff] }
   0x4   :  { %875 = vmatprep.subr.bf16.mxu1 %v1020_v0  ;;  %863 = vmatprep.subr.bf16.mxu0 %v952_v3  ;;  %v32_v8 = vpack.c.bf16 %v25_v6, %v24_v5  ;;  %v1113_v14 = vld [vmem:[%s1242_s3] ss:$0 sm:$0xff]  ;;  %s1024_s3 = smov 32   ;;  %v29_v55 = vld [vmem:[%s1241_s0 + $0x28] sm:$0xff]  ;;  %v31_v58 = vld [vmem:[%s1241_s0 + $0x38] sm:$0xff] }
   0x5   :  { %v28_v54 = vld [vmem:[%s1241_s0 + $0x20] sm:$0xff]  ;;  %v35_v59 = vpack.c.bf16 %v31_v58, %v30_v56 }
   0x6   :  { %865 = vmatprep.mubr.msk.bf16.mxu0 %vm59_vm1, %v32_v8  ;;  %v34_v57 = vpack.c.bf16 %v29_v55, %v28_v54 }
   0x7   :  { %876 = vmatpush3.bf16.msra.mxu1 %v1078_v4  ;;  %864 = vmatpush3.bf16.msra.mxu0 %v952_v3 }
   0x8   :  { %881 = vmatprep.subr.bf16.mxu1 %v1020_v0  ;;  %889 = vmatprep.subr.bf16.mxu0 %v1020_v0 }
   0xa   :  { %878 = vmatmul.mubr.bf16.vlgmr.msra.gmra.mxu1 %v1022_v11  ;;  %866 = vmatmul.mubr.msk.bf16.vlgmr.msra.gmra.mxu0 %vm59_vm1, %v33_v10 }
   0xb   :  { %882 = vmatpush3.bf16.msra.mxu1 %v1069_v2  ;;  %885 = vmatprep.mubr.msk.bf16.mxu1 %vm1021_vm0, %v1020_v0 }
   0xc   :  { %883 = vmatprep.subr.bf16.mxu1 %v1020_v0  ;;  %890 = vmatpush3.bf16.msra.mxu0 %v1069_v2 }
   0xd   :  { %891 = vmatprep.subr.bf16.mxu0 %v1020_v0  ;;  %869 = vmatprep.mubr.msk.bf16.mxu0 %vm59_vm1, %v34_v57 }
   0xf   :  { %884 = vmatpush3.bf16.msra.mxu1 %v1078_v4 }
  0x10   :  { %892 = vmatpush3.bf16.msra.mxu0 %v1078_v4  ;;  %897 = vmatprep.subr.bf16.mxu1 %v1020_v0 }
  0x11   :  { %905 = vmatprep.subr.bf16.mxu0 %v1020_v0 }
  0x12   :  { %870 = vmatmul.mubr.msk.bf16.gmra.mxu0 %vm59_vm1, %v35_v59 }
  0x13   :  { %893 = vmatprep.mubr.msk.bf16.mxu0 %vm1021_vm0, %v1020_v0 }
  0xca   :  { %v190_v12 = vpop.f32.mrf.mxu1  ;;  %v1108_v13 = vpop.f32.mrf.mxu0 }
  0xcb   :  { %v115_v8 = vadd.f32 %v1108_v13, %v1113_v14 }
  0xcc   :  { %v879_v15 = vpop.f32.mrf.mxu1  ;;  %v106_v16 = vpop.f32.mrf.mxu0 }
  0xcd   :  { %v107_v17 = vadd.f32 %v1113_v14, %v106_v16 }
  0xce   :  { %v193_v18 = vpop.f32.mrf.mxu1  ;;  %v1127_v36 = vpop.f32.mrf.mxu0 }
  0xcf   :  { %v196_v19 = vadd.f32 %v190_v12, %v107_v17 }
  0xd0   :  { %v880_v20 = vpop.f32.mrf.mxu1  ;;  %v109_v37 = vpop.f32.mrf.mxu0 }
  0xd1   :  { %956 = vtanh.f32 %v196_v19  ;;  %v809_v22 = vmul.f32 -1.442695, %v196_v19  ;;  %v110_v38 = vadd.f32 %v1113_v14, %v109_v37 }
  0xd2   :  { %v1157_v3 = vpop.f32.mrf.mxu0 }
  0xd3   :  { %958 = vpow2.f32 %v809_v22 }
  0xd4   :  { %v1159_v5 = vpop.f32.mrf.mxu0 }
  0xd6   :  { %v1161_v6 = vpop.f32.mrf.mxu0 }
  0xd8   :  { %v1163_v7 = vpop.f32.mrf.mxu0 }
  0xde   :  { %v957_v21 = vpop.eup %956 }
  0xdf   :  { %206 = vrot.lane.b32.xlu0 %v957_v21, %s1023_s13 }
  0xe0   :  { %v959_v23 = vpop.eup %958 }
  0xe1   :  { %v200_v24 = vadd.f32 1.0, %v959_v23 }
  0xe3   :  { %960 = vrcp.f32 %v200_v24 }
  0xf0   :  { %v961_v25 = vpop.eup %960 }
  0xf1   :  { %v204_v28 = vmul.f32 0.0, %v961_v25 }
 0x151   :  { %v207_v26 = vpop.permute.xlu0 %206 }
 0x152   :  { %v209_v27 = vmul.f32 %v961_v25, %v207_v26 }
 0x154   :  { %211 = vrot.lane.b32.xlu0 %v209_v27, %s1024_s3 }
 0x1c6   :  { %v212_v29 = vpop.permute.xlu0 %211 }
 0x1c7   :  { %v214_v30 = vadd.f32 %v212_v29, %v204_v28 }
 0x1c9   :  { %962 = vtanh.f32 %v214_v30 }
 0x1d6   :  { %v963_v31 = vpop.eup %962 }
 0x1d7   :  { %217 = vrot.lane.b32.xlu1 %v963_v31, %s1023_s13 }
 0x249   :  { %v218_v32 = vpop.permute.xlu1 %217 }
 0x24a   :  { %v220_v33 = vmul.f32 %v961_v25, %v218_v32 }
 0x24c   :  { %v221_v34 = vpack.c.bf16 %v220_v33, %v220_v33 }
 0x24e   :  { %223 = vrot.lane.b32.xlu1 %v221_v34, %s1024_s3 }
 0x2c0   :  { %v224_v35 = vpop.permute.xlu1 %223 }
 0x2c1   :  { %886 = vmatmul.mubr.msk.bf16.vlgmr.msra.gmra.mxu1 %vm59_vm1, %v224_v35 }
 0x2c2   :  { %898 = vmatpush3.bf16.msra.mxu1 %v1069_v2  ;;  %901 = vmatprep.mubr.msk.bf16.mxu1 %vm1021_vm0, %v1020_v0 }
 0x2c3   :  { %899 = vmatprep.subr.bf16.mxu1 %v1020_v0 }
 0x2c6   :  { %900 = vmatpush3.bf16.msra.mxu1 %v1078_v4 }
 0x2c7   :  { %913 = vmatprep.subr.bf16.mxu1 %v1020_v0 }
 0x381   :  { %v262_v39 = vpop.f32.mrf.mxu1 }
 0x382   :  { %v268_v40 = vadd.f32 %v262_v39, %v110_v38 }
 0x383   :  { %v887_v41 = vpop.f32.mrf.mxu1 }
 0x384   :  { %964 = vtanh.f32 %v268_v40  ;;  %v811_v45 = vmul.f32 -1.442695, %v268_v40 }
 0x385   :  { %v265_v42 = vpop.f32.mrf.mxu1 }
 0x386   :  { %966 = vpow2.f32 %v811_v45 }
 0x387   :  { %v888_v43 = vpop.f32.mrf.mxu1 }
 0x391   :  { %v965_v44 = vpop.eup %964 }
 0x392   :  { %278 = vrot.lane.b32.xlu0 %v965_v44, %s1023_s13 }
 0x393   :  { %v967_v46 = vpop.eup %966 }
 0x394   :  { %v272_v47 = vadd.f32 1.0, %v967_v46 }
 0x396   :  { %968 = vrcp.f32 %v272_v47 }
 0x3a3   :  { %v969_v48 = vpop.eup %968 }
 0x3a4   :  { %v276_v51 = vmul.f32 %v969_v48, %v214_v30  ;;  %v118_v30 = vadd.f32 %v1127_v36, %v1113_v14 }
 0x404   :  { %v279_v49 = vpop.permute.xlu0 %278 }
 0x405   :  { %v281_v50 = vmul.f32 %v969_v48, %v279_v49 }
 0x407   :  { %283 = vrot.lane.b32.xlu1 %v281_v50, %s1024_s3 }
 0x479   :  { %v284_v52 = vpop.permute.xlu1 %283 }
 0x47a   :  { %v286_v53 = vadd.f32 %v284_v52, %v276_v51  ;;  %v123_v51 = vadd.f32 %v1113_v14, %v1159_v5 }
 0x47c   :  { %970 = vtanh.f32 %v286_v53 }
 0x489   :  { %v971_v60 = vpop.eup %970 }
 0x48a   :  { %289 = vrot.lane.b32.xlu0 %v971_v60, %s1023_s13 }
 0x4fc   :  { %v290_v61 = vpop.permute.xlu0 %289 }
 0x4fd   :  { %v292_v62 = vmul.f32 %v969_v48, %v290_v61 }
 0x4ff   :  { %v293_v63 = vpack.c.bf16 %v292_v62, %v292_v62 }
 0x501   :  { %295 = vrot.lane.b32.xlu1 %v293_v63, %s1024_s3 }
 0x573   :  { %v296_v1 = vpop.permute.xlu1 %295 }
 0x574   :  { %894 = vmatmul.mubr.msk.bf16.vlgmr.msra.gmra.mxu0 %vm59_vm1, %v296_v1 }
 0x575   :  { %906 = vmatpush3.bf16.msra.mxu0 %v1069_v2  ;;  %909 = vmatprep.mubr.msk.bf16.mxu0 %vm1021_vm0, %v1020_v0 }
 0x576   :  { %907 = vmatprep.subr.bf16.mxu0 %v1020_v0 }
 0x579   :  { %908 = vmatpush3.bf16.msra.mxu0 %v1078_v4 }
 0x57a   :  { %921 = vmatprep.subr.bf16.mxu0 %v1020_v0 }
 0x634   :  { %v334_v9 = vpop.f32.mrf.mxu0 }
 0x635   :  { %v340_v10 = vadd.f32 %v334_v9, %v115_v8 }
 0x636   :  { %v895_v11 = vpop.f32.mrf.mxu0 }
 0x637   :  { %972 = vtanh.f32 %v340_v10  ;;  %v813_v17 = vmul.f32 -1.442695, %v340_v10 }
 0x638   :  { %v337_v12 = vpop.f32.mrf.mxu0 }
 0x639   :  { %974 = vpow2.f32 %v813_v17 }
 0x63a   :  { %v896_v15 = vpop.f32.mrf.mxu0 }
 0x644   :  { %v973_v16 = vpop.eup %972 }
 0x645   :  { %350 = vrot.lane.b32.xlu0 %v973_v16, %s1023_s13  ;;  %v126_v16 = vadd.f32 %v1113_v14, %v1163_v7 }
 0x646   :  { %v975_v18 = vpop.eup %974 }
 0x647   :  { %v344_v19 = vadd.f32 1.0, %v975_v18 }
 0x649   :  { %976 = vrcp.f32 %v344_v19 }
 0x656   :  { %v977_v20 = vpop.eup %976 }
 0x657   :  { %v348_v13 = vmul.f32 %v977_v20, %v286_v53 }
 0x6b7   :  { %v351_v21 = vpop.permute.xlu0 %350 }
 0x6b8   :  { %v353_v22 = vmul.f32 %v977_v20, %v351_v21 }
 0x6ba   :  { %355 = vrot.lane.b32.xlu1 %v353_v22, %s1024_s3 }
 0x72c   :  { %v356_v23 = vpop.permute.xlu1 %355 }
 0x72d   :  { %v358_v24 = vadd.f32 %v356_v23, %v348_v13 }
 0x72f   :  { %978 = vtanh.f32 %v358_v24 }
 0x73c   :  { %v979_v25 = vpop.eup %978 }
 0x73d   :  { %361 = vrot.lane.b32.xlu0 %v979_v25, %s1023_s13 }
 0x7af   :  { %v362_v26 = vpop.permute.xlu0 %361 }
 0x7b0   :  { %v364_v27 = vmul.f32 %v977_v20, %v362_v26 }
 0x7b2   :  { %v365_v28 = vpack.c.bf16 %v364_v27, %v364_v27 }
 0x7b4   :  { %367 = vrot.lane.b32.xlu1 %v365_v28, %s1024_s3 }
 0x826   :  { %v368_v29 = vpop.permute.xlu1 %367 }
 0x827   :  { %902 = vmatmul.mubr.msk.bf16.vlgmr.msra.gmra.mxu1 %vm59_vm1, %v368_v29 }
 0x828   :  { %914 = vmatpush3.bf16.msra.mxu1 %v1069_v2  ;;  %917 = vmatprep.mubr.msk.bf16.mxu1 %vm1021_vm0, %v1020_v0 }
 0x829   :  { %915 = vmatprep.subr.bf16.mxu1 %v1020_v0 }
 0x82c   :  { %916 = vmatpush3.bf16.msra.mxu1 %v1078_v4 }
 0x82d   :  { %929 = vmatprep.subr.bf16.mxu1 %v1020_v0 }
 0x8e7   :  { %v406_v31 = vpop.f32.mrf.mxu1 }
 0x8e8   :  { %v412_v32 = vadd.f32 %v406_v31, %v118_v30 }
 0x8e9   :  { %v903_v33 = vpop.f32.mrf.mxu1 }
 0x8ea   :  { %980 = vtanh.f32 %v412_v32  ;;  %v815_v38 = vmul.f32 -1.442695, %v412_v32  ;;  %v131_v33 = vadd.f32 %v1157_v3, %v1113_v14 }
 0x8eb   :  { %v409_v34 = vpop.f32.mrf.mxu1 }
 0x8ec   :  { %982 = vpow2.f32 %v815_v38 }
 0x8ed   :  { %v904_v35 = vpop.f32.mrf.mxu1 }
 0x8f7   :  { %v981_v37 = vpop.eup %980 }
 0x8f8   :  { %422 = vrot.lane.b32.xlu0 %v981_v37, %s1023_s13 }
 0x8f9   :  { %v983_v39 = vpop.eup %982 }
 0x8fa   :  { %v416_v40 = vadd.f32 1.0, %v983_v39 }
 0x8fc   :  { %984 = vrcp.f32 %v416_v40 }
 0x909   :  { %v985_v41 = vpop.eup %984 }
 0x90a   :  { %v420_v36 = vmul.f32 %v985_v41, %v358_v24 }
 0x96a   :  { %v423_v42 = vpop.permute.xlu0 %422 }
 0x96b   :  { %v425_v43 = vmul.f32 %v985_v41, %v423_v42 }
 0x96d   :  { %427 = vrot.lane.b32.xlu1 %v425_v43, %s1024_s3 }
 0x9df   :  { %v428_v44 = vpop.permute.xlu1 %427 }
 0x9e0   :  { %v430_v45 = vadd.f32 %v428_v44, %v420_v36 }
 0x9e2   :  { %986 = vtanh.f32 %v430_v45 }
 0x9ef   :  { %v987_v46 = vpop.eup %986 }
 0x9f0   :  { %433 = vrot.lane.b32.xlu0 %v987_v46, %s1023_s13 }
 0xa62   :  { %v434_v47 = vpop.permute.xlu0 %433 }
 0xa63   :  { %v436_v48 = vmul.f32 %v985_v41, %v434_v47 }
 0xa65   :  { %v437_v49 = vpack.c.bf16 %v436_v48, %v436_v48 }
 0xa67   :  { %439 = vrot.lane.b32.xlu1 %v437_v49, %s1024_s3 }
 0xad9   :  { %v440_v50 = vpop.permute.xlu1 %439 }
 0xada   :  { %910 = vmatmul.mubr.msk.bf16.vlgmr.msra.gmra.mxu0 %vm59_vm1, %v440_v50 }
 0xadb   :  { %922 = vmatpush3.bf16.msra.mxu0 %v1069_v2  ;;  %925 = vmatprep.mubr.msk.bf16.mxu0 %vm1021_vm0, %v1020_v0 }
 0xadc   :  { %923 = vmatprep.subr.bf16.mxu0 %v1020_v0 }
 0xadf   :  { %924 = vmatpush3.bf16.msra.mxu0 %v1078_v4 }
 0xae0   :  { %937 = vmatprep.subr.bf16.mxu0 %v1020_v0 }
 0xb9a   :  { %v478_v52 = vpop.f32.mrf.mxu0 }
 0xb9b   :  { %v484_v53 = vadd.f32 %v478_v52, %v123_v51 }
 0xb9c   :  { %v911_v54 = vpop.f32.mrf.mxu0 }
 0xb9d   :  { %988 = vtanh.f32 %v484_v53  ;;  %v817_v58 = vmul.f32 -1.442695, %v484_v53  ;;  %v134_v53 = vadd.f32 %v1161_v6, %v1113_v14 }
 0xb9e   :  { %v481_v55 = vpop.f32.mrf.mxu0 }
 0xb9f   :  { %990 = vpow2.f32 %v817_v58 }
 0xba0   :  { %v912_v56 = vpop.f32.mrf.mxu0 }
 0xbaa   :  { %v989_v57 = vpop.eup %988 }
 0xbab   :  { %494 = vrot.lane.b32.xlu0 %v989_v57, %s1023_s13 }
 0xbac   :  { %v991_v59 = vpop.eup %990 }
 0xbad   :  { %v488_v60 = vadd.f32 1.0, %v991_v59 }
 0xbaf   :  { %992 = vrcp.f32 %v488_v60 }
 0xbbc   :  { %v993_v61 = vpop.eup %992 }
 0xbbd   :  { %v492_v1 = vmul.f32 %v993_v61, %v430_v45 }
 0xc1d   :  { %v495_v62 = vpop.permute.xlu0 %494 }
 0xc1e   :  { %v497_v63 = vmul.f32 %v993_v61, %v495_v62 }
 0xc20   :  { %499 = vrot.lane.b32.xlu1 %v497_v63, %s1024_s3 }
 0xc92   :  { %v500_v5 = vpop.permute.xlu1 %499 }
 0xc93   :  { %v502_v8 = vadd.f32 %v500_v5, %v492_v1 }
 0xc95   :  { %994 = vtanh.f32 %v502_v8 }
 0xca2   :  { %v995_v9 = vpop.eup %994 }
 0xca3   :  { %505 = vrot.lane.b32.xlu0 %v995_v9, %s1023_s13  ;;  %v954_v9 = vld [vmem:[%s1243_s4 + $0x8] sm:$0xff]  }
 0xd15   :  { %v506_v10 = vpop.permute.xlu0 %505 }
 0xd16   :  { %v508_v11 = vmul.f32 %v993_v61, %v506_v10  ;;  %v955_v10 = vld [vmem:[%s1243_s4] sm:$0xff]  }
 0xd18   :  { %v509_v12 = vpack.c.bf16 %v508_v11, %v508_v11 }
 0xd1a   :  { %511 = vrot.lane.b32.xlu1 %v509_v12, %s1024_s3 }
 0xd8c   :  { %v512_v15 = vpop.permute.xlu1 %511 }
 0xd8d   :  { %918 = vmatmul.mubr.msk.bf16.vlgmr.msra.gmra.mxu1 %vm59_vm1, %v512_v15 }
 0xd8e   :  { %930 = vmatpush3.bf16.msra.mxu1 %v1069_v2  ;;  %933 = vmatprep.mubr.msk.bf16.mxu1 %vm1021_vm0, %v1020_v0 }
 0xd8f   :  { %931 = vmatprep.subr.bf16.mxu1 %v1020_v0 }
 0xd92   :  { %932 = vmatpush3.bf16.msra.mxu1 %v1078_v4 }
 0xe4d   :  { %v550_v17 = vpop.f32.mrf.mxu1 }
 0xe4e   :  { %v556_v18 = vadd.f32 %v550_v17, %v126_v16 }
 0xe4f   :  { %v919_v19 = vpop.f32.mrf.mxu1 }
 0xe50   :  { %996 = vtanh.f32 %v556_v18  ;;  %v819_v2 = vmul.f32 -1.442695, %v556_v18  ;;  %v824_v18 = vld [vmem:[%s1244_s5] ss:$0 sm:$0xff] }
 0xe51   :  { %v553_v20 = vpop.f32.mrf.mxu1 }
 0xe52   :  { %998 = vpow2.f32 %v819_v2 }
 0xe53   :  { %v920_v21 = vpop.f32.mrf.mxu1 }
 0xe5d   :  { %v997_v22 = vpop.eup %996 }
 0xe5e   :  { %566 = vrot.lane.b32.xlu0 %v997_v22, %s1023_s13 }
 0xe5f   :  { %v999_v13 = vpop.eup %998 }
 0xe60   :  { %v560_v23 = vadd.f32 1.0, %v999_v13 }
 0xe62   :  { %1000 = vrcp.f32 %v560_v23 }
 0xe6f   :  { %v1001_v24 = vpop.eup %1000 }
 0xe70   :  { %v564_v7 = vmul.f32 %v1001_v24, %v502_v8 }
 0xed0   :  { %v567_v25 = vpop.permute.xlu0 %566 }
 0xed1   :  { %v569_v4 = vmul.f32 %v1001_v24, %v567_v25 }
 0xed3   :  { %571 = vrot.lane.b32.xlu1 %v569_v4, %s1024_s3 }
 0xf45   :  { %v572_v26 = vpop.permute.xlu1 %571 }
 0xf46   :  { %v574_v27 = vadd.f32 %v572_v26, %v564_v7 }
 0xf48   :  { %1002 = vtanh.f32 %v574_v27 }
 0xf55   :  { %v1003_v28 = vpop.eup %1002 }
 0xf56   :  { %577 = vrot.lane.b32.xlu0 %v1003_v28, %s1023_s13 }
 0xfc8   :  { %v578_v29 = vpop.permute.xlu0 %577 }
 0xfc9   :  { %v580_v30 = vmul.f32 %v1001_v24, %v578_v29 }
 0xfcb   :  { %v581_v31 = vpack.c.bf16 %v580_v30, %v580_v30 }
 0xfcd   :  { %583 = vrot.lane.b32.xlu1 %v581_v31, %s1024_s3 }
0x103f   :  { %v584_v32 = vpop.permute.xlu1 %583 }
0x1040   :  { %926 = vmatmul.mubr.msk.bf16.vlgmr.msra.gmra.mxu0 %vm59_vm1, %v584_v32 }
0x1041   :  { %941 = vmatprep.mubr.msk.bf16.mxu0 %vm1021_vm0, %v1020_v0  ;;  %938 = vmatpush3.bf16.msra.mxu0 %v954_v9 }
0x1042   :  { %939 = vmatprep.subr.bf16.mxu0 %v1020_v0 }
0x1045   :  { %940 = vmatpush3.bf16.msra.mxu0 %v955_v10 }
0x1100   :  { %v622_v34 = vpop.f32.mrf.mxu0 }
0x1101   :  { %v628_v35 = vadd.f32 %v622_v34, %v131_v33 }
0x1102   :  { %v927_v37 = vpop.f32.mrf.mxu0 }
0x1103   :  { %1004 = vtanh.f32 %v628_v35  ;;  %v821_v41 = vmul.f32 -1.442695, %v628_v35 }
0x1104   :  { %v625_v38 = vpop.f32.mrf.mxu0 }
0x1105   :  { %1006 = vpow2.f32 %v821_v41 }
0x1106   :  { %v928_v39 = vpop.f32.mrf.mxu0 }
0x1110   :  { %v1005_v40 = vpop.eup %1004 }
0x1111   :  { %638 = vrot.lane.b32.xlu0 %v1005_v40, %s1023_s13 }
0x1112   :  { %v1007_v42 = vpop.eup %1006 }
0x1113   :  { %v632_v43 = vadd.f32 1.0, %v1007_v42 }
0x1115   :  { %1008 = vrcp.f32 %v632_v43 }
0x1122   :  { %v1009_v36 = vpop.eup %1008 }
0x1123   :  { %v636_v3 = vmul.f32 %v1009_v36, %v574_v27 }
0x1183   :  { %v639_v44 = vpop.permute.xlu0 %638 }
0x1184   :  { %v641_v45 = vmul.f32 %v1009_v36, %v639_v44 }
0x1186   :  { %643 = vrot.lane.b32.xlu1 %v641_v45, %s1024_s3 }
0x11f8   :  { %v644_v46 = vpop.permute.xlu1 %643 }
0x11f9   :  { %v646_v47 = vadd.f32 %v644_v46, %v636_v3 }
0x11fb   :  { %1010 = vtanh.f32 %v646_v47 }
0x1208   :  { %v1011_v48 = vpop.eup %1010 }
0x1209   :  { %649 = vrot.lane.b32.xlu0 %v1011_v48, %s1023_s13 }
0x127b   :  { %v650_v49 = vpop.permute.xlu0 %649 }
0x127c   :  { %v652_v50 = vmul.f32 %v1009_v36, %v650_v49 }
0x127e   :  { %v653_v51 = vpack.c.bf16 %v652_v50, %v652_v50 }
0x1280   :  { %655 = vrot.lane.b32.xlu1 %v653_v51, %s1024_s3 }
0x12f2   :  { %v656_v52 = vpop.permute.xlu1 %655 }
0x12f3   :  { %934 = vmatmul.mubr.msk.bf16.vlgmr.msra.gmra.mxu1 %vm59_vm1, %v656_v52 }
0x13b3   :  { %v694_v54 = vpop.f32.mrf.mxu1 }
0x13b4   :  { %v700_v55 = vadd.f32 %v694_v54, %v134_v53 }
0x13b5   :  { %v935_v56 = vpop.f32.mrf.mxu1 }
0x13b6   :  { %1012 = vtanh.f32 %v700_v55  ;;  %v823_v60 = vmul.f32 -1.442695, %v700_v55 }
0x13b7   :  { %v697_v57 = vpop.f32.mrf.mxu1 }
0x13b8   :  { %1014 = vpow2.f32 %v823_v60 }
0x13b9   :  { %v936_v58 = vpop.f32.mrf.mxu1 }
0x13c3   :  { %v1013_v59 = vpop.eup %1012 }
0x13c4   :  { %710 = vrot.lane.b32.xlu0 %v1013_v59, %s1023_s13 }
0x13c5   :  { %v1015_v61 = vpop.eup %1014 }
0x13c6   :  { %v704_v62 = vadd.f32 1.0, %v1015_v61 }
0x13c8   :  { %1016 = vrcp.f32 %v704_v62 }
0x13d5   :  { %v1017_v63 = vpop.eup %1016 }
0x13d6   :  { %v708_v14 = vmul.f32 %v1017_v63, %v646_v47 }
0x1436   :  { %v711_v1 = vpop.permute.xlu0 %710 }
0x1437   :  { %v713_v5 = vmul.f32 %v1017_v63, %v711_v1 }
0x1439   :  { %715 = vrot.lane.b32.xlu1 %v713_v5, %s1024_s3 }
0x14ab   :  { %v716_v6 = vpop.permute.xlu1 %715 }
0x14ac   :  { %v718_v8 = vadd.f32 %v716_v6, %v708_v14 }
0x14ae   :  { %1018 = vtanh.f32 %v718_v8 }
0x14bb   :  { %v1019_v11 = vpop.eup %1018 }
0x14bc   :  { %721 = vrot.lane.b32.xlu0 %v1019_v11, %s1023_s13 }
0x152e   :  { %v722_v12 = vpop.permute.xlu0 %721 }
0x152f   :  { %v724_v15 = vmul.f32 %v1017_v63, %v722_v12 }
0x1531   :  { %v725_v16 = vpack.c.bf16 %v724_v15, %v724_v15 }
0x1533   :  { %738 = vrot.lane.b32.xlu1 %v725_v16, %s1024_s3 }
0x15a5   :  { %v739_v17 = vpop.permute.xlu1 %738 }
0x15a6   :  { %942 = vmatmul.mubr.msk.bf16.vlgmr.msra.gmra.mxu0 %vm59_vm1, %v739_v17 }
0x1666   :  { %v789_v19 = vpop.f32.mrf.mxu0 }
0x1667   :  { %v790_v20 = vadd.f32 %v824_v18, %v789_v19 }
0x1668   :  { %v943_v21 = vpop.f32.mrf.mxu0 }
0x1669   :  { %795 = vst [vmem:[%s1245_s6] sm:$0xff] %v790_v20 }
0x166a   :  { %v792_v0 = vpop.f32.mrf.mxu0 }
0x166c   :  { %v944_v22 = vpop.f32.mrf.mxu0 }

</bundles_post_ra>
